<compile_context>
chip_gen: v7x
topology: tpu7x:2x2x1
jax: 0.10.0
libtpu: 0.0.40
codegen_flags: <defaults>
</compile_context>

<pallas_src>
import jax
import jax.numpy as jnp
from jax import lax
from jax.experimental import pallas as pl
from jax.experimental.pallas import tpu as pltpu


def _nconv_kernel(x_ref, a_ref, o_ref):
    # x_ref: (Nb, V, CLt), a_ref: (Nb, W, V), o_ref: (Nb, W, CLt)
    # Batched contraction over V on the MXU, f32 accumulation.
    o_ref[...] = lax.dot_general(
        a_ref[...],
        x_ref[...],
        dimension_numbers=(((2,), (1,)), ((0,), (0,))),
        preferred_element_type=jnp.float32,
    ).astype(o_ref.dtype)


def nconv(x, A, *, cl_tile=None, n_block=None):
    """x: (N, C, V, L), A: (N, W, V) -> (N, C, W, L)  (== einsum 'ncvl,nwv->ncwl')."""
    N, C, V, L = x.shape
    Na, W, Va = A.shape
    assert N == Na and V == Va

    CL = C * L
    # Fuse (C, L) -> lane-dense last dim: (N, C, V, L) -> (N, V, C*L).
    x_r = jnp.transpose(x, (0, 2, 1, 3)).reshape(N, V, CL)

    itemsize = jnp.dtype(x.dtype).itemsize

    # --- Tile along the fused CL dim -------------------------------------
    # Multiple of 256 (v6e/v7x MXU width), never below 256, capped at 2048.
    # cl_tile need NOT divide CL: grid uses cdiv and the tail block is masked,
    # so no padded copy of x is materialized.
    if cl_tile is None:
        cl_tile = min(2048, max(256, -(-CL // 256) * 256))
    assert cl_tile % 128 == 0
    grid_cl = pl.cdiv(CL, cl_tile)

    # --- Batch elements per grid step ------------------------------------
    # Double-buffered working set per batch element:
    #   2 * itemsize * ((V + W) * cl_tile + W * V)
    # Size Nb so the total stays ~<=10 MiB (fits v5e's 16 MiB scoped default,
    # leaves headroom under v7x's 64 MiB physical VMEM) while amortizing the
    # ~0.35 us per-step pipeline overhead.
    per_n_bytes = 2 * itemsize * ((V + W) * cl_tile + W * V)
    vmem_target = 10 * 1024 * 1024
    if n_block is None:
        n_block = max(1, vmem_target // per_n_bytes)
        n_block = int(min(n_block, N, 8))
        if N >= 2:
            # Keep at least two n-blocks so both v7x TensorCores get work.
            n_block = min(n_block, (N + 1) // 2)
    grid_n = pl.cdiv(N, n_block)

    # Explicit scoped-VMEM limit: matches the v6e/v7x default, doubles v5e's,
    # and is far above the <=~10 MiB working set sized above.
    vmem_limit = 32 * 1024 * 1024

    bytes_accessed = (x_r.size + A.size + N * W * CL) * itemsize

    out_r = pl.pallas_call(
        _nconv_kernel,
        out_shape=jax.ShapeDtypeStruct((N, W, CL), x.dtype),
        grid_spec=pltpu.PrefetchScalarGridSpec(
            num_scalar_prefetch=0,
            grid=(grid_n, grid_cl),
            in_specs=[
                # x tile streams along the inner CL axis.
                pl.BlockSpec((n_block, V, cl_tile), lambda n, t: (n, 0, t)),
                # A block constant along the inner axis -> fetched once per
                # n-block and kept resident.
                pl.BlockSpec((n_block, W, V), lambda n, t: (n, 0, 0)),
            ],
            out_specs=pl.BlockSpec((n_block, W, cl_tile), lambda n, t: (n, 0, t)),
        ),
        compiler_params=pltpu.CompilerParams(
            # No accumulation along either grid axis -> both parallel
            # (megacore sharding on v7x; near-neutral on single-TC parts).
            dimension_semantics=("parallel", "parallel"),
            vmem_limit_bytes=vmem_limit,
        ),
        cost_estimate=pl.CostEstimate(
            flops=int(2 * N * W * V * CL),
            transcendentals=0,
            bytes_accessed=int(bytes_accessed),
        ),
    )(x_r, A)

    # Un-fuse: (N, W, C*L) -> (N, C, W, L).
    return jnp.transpose(out_r.reshape(N, W, C, L), (0, 2, 1, 3))


if __name__ == "__main__":
    # Small shapes consistent with the einsum: N=2, C=4, V=16, W=16, L=8.
    key = jax.random.PRNGKey(0)
    kx, ka = jax.random.split(key)
    N, C, V, W, L = 2, 4, 16, 16, 8
    x = jax.random.normal(kx, (N, C, V, L), dtype=jnp.float32)
    A = jax.random.normal(ka, (N, W, V), dtype=jnp.float32)

    out = jax.block_until_ready(nconv(x, A))

    ref = jnp.einsum("ncvl,nwv->ncwl", x, A)
    assert out.shape == (N, C, W, L)
    assert jnp.allclose(out, ref, atol=1e-5, rtol=1e-5)

    print("KERNEL_OK")
</pallas_src>

<mosaic_0001>
module attributes {stable_mosaic.version = 11 : i64} {
  func.func @_nconv_kernel(%arg0: i32, %arg1: i32, %arg2: memref<1x16x256xf32, #tpu.memory_space<vmem>>, %arg3: memref<1x16x16xf32, #tpu.memory_space<vmem>>, %arg4: memref<1x16x256xf32, #tpu.memory_space<vmem>>) attributes {dimension_semantics = [#tpu.dimension_semantics<parallel>, #tpu.dimension_semantics<parallel>], iteration_bounds = array<i64: 2, 1>, scalar_prefetch = 0 : i64, scratch_operands = 0 : i64, tpu.core_type = #tpu.core_type<tc>, window_params = [{transform_indices = @transform_0, window_bounds = array<i64: 1, 16, 256>}, {transform_indices = @transform_1, window_bounds = array<i64: 1, 16, 16>}, {transform_indices = @transform_2, window_bounds = array<i64: 1, 16, 256>}]} {
    %c0 = arith.constant 0 : index
    %c0_0 = arith.constant 0 : index
    %c0_1 = arith.constant 0 : index
    %0 = vector.load %arg3[%c0, %c0_0, %c0_1] : memref<1x16x16xf32, #tpu.memory_space<vmem>>, vector<1x16x16xf32>
    %c0_2 = arith.constant 0 : index
    %c0_3 = arith.constant 0 : index
    %c0_4 = arith.constant 0 : index
    %1 = vector.load %arg2[%c0_2, %c0_3, %c0_4] : memref<1x16x256xf32, #tpu.memory_space<vmem>>, vector<1x16x256xf32>
    %cst = arith.constant dense<0.000000e+00> : vector<1x16x256xf32>
    %2 = tpu.matmul %0, %1, %cst {dimension_numbers = #tpu.dot_dimension_numbers<[2], [1], [1], [2], [0, 0, 0, 1, 1, 2], [0], [0]>} : vector<1x16x16xf32>, vector<1x16x256xf32>, vector<1x16x256xf32> -> vector<1x16x256xf32>
    %c0_5 = arith.constant 0 : index
    %c0_6 = arith.constant 0 : index
    %c0_7 = arith.constant 0 : index
    %3 = vector.load %arg4[%c0_5, %c0_6, %c0_7] : memref<1x16x256xf32, #tpu.memory_space<vmem>>, vector<1x16x256xf32>
    tpu.vector_store %arg4[%c0_5, %c0_6, %c0_7], %2 {strides = array<i32>} : memref<1x16x256xf32, #tpu.memory_space<vmem>>, vector<1x16x256xf32>,
    return
  }
  func.func @transform_0(%arg0: i32, %arg1: i32) -> (i32, i32, i32) {
    %c0_i32 = arith.constant 0 : i32
    %c0_i32_0 = arith.constant 0 : i32
    return %arg0, %c0_i32, %arg1 : i32, i32, i32
  }
  func.func @transform_1(%arg0: i32, %arg1: i32) -> (i32, i32, i32) {
    %c0_i32 = arith.constant 0 : i32
    %c0_i32_0 = arith.constant 0 : i32
    %c0_i32_1 = arith.constant 0 : i32
    return %arg0, %c0_i32, %c0_i32_0 : i32, i32, i32
  }
  func.func @transform_2(%arg0: i32, %arg1: i32) -> (i32, i32, i32) {
    %c0_i32 = arith.constant 0 : i32
    %c0_i32_0 = arith.constant 0 : i32
    return %arg0, %c0_i32, %arg1 : i32, i32, i32
  }
}

</mosaic_0001>

<bundles_post_ra>
// kernel: tpu_custom_call.1
= control target key start
LH: loop header
LB: loop body
LE: loop exit
PB: predicated region body
PF: predicated region fallthrough
CT: control target
= control target key end

     0   :  { %7 = vsyncpa [#allocation3], 0  ;;  %s913_s0 = inlined_call_operand.hbm [shape: f32[2,16,32], index: 0, kind: input, shape index: {}]   ;;  %s914_s1 = inlined_call_operand.hbm [shape: f32[2,16,16], index: 1, kind: input, shape index: {}]   ;;  %s915_s2 = inlined_call_operand.hbm [shape: f32[2,16,32], index: 2, kind: output, shape index: {}]  }
   0x1   :  { %9 = vsyncpa [#allocation3 + $0x1], 0 }
   0x2   :  { %10 = vsyncpa [#allocation6], 0 }
   0x3   :  { %12 = vsyncpa [#allocation6 + $0x1], 0 }
   0x4   :  { %13 = vsyncpa [#allocation4], 0 }
   0x5   :  { %15 = vsyncpa [#allocation4 + $0x1], 0  ;;  %s715_s9 = smov 0   ;;  %s717_s10 = smov 0  }
   0x6   :  { %s719_s11 = smov 0   ;;  %s721_s12 = smov 0  }
   0x7   :  { %s723_s13 = smov 0   ;;  %s725_s14 = smov 0  }
   0x8 LB: > { %s456_s15 = sadd.s32 4294967295, %s686_s14   ;;  %s457_s16 = sadd.s32 4294967294, %s686_s14   ;;  %s686_s14 = sphi %s725_s14, %s21_s14   ;;  %s682_s13 = sphi %s723_s13, %s928_s13   ;;  %s678_s12 = sphi %s721_s12, %s927_s12   ;;  %s674_s11 = sphi %s719_s11, %s926_s11   ;;  %s670_s10 = sphi %s717_s10, %s925_s10   ;;  %s666_s9 = sphi %s715_s9, %s924_s9  }
   0x9   : > { %s33_s17 = sadd.s32 1, %s682_s13  ;;  %s42_s18 = sadd.s32 1, %s674_s11 }
   0xa   : > { %p35_p0 = scmp.ge.s32.totalorder %s33_s17, 2  ;;  %p49_p1 = scmp.ne.s32.totalorder %s674_s11, %s670_s10 }
   0xb   : > { %p50_p2 = scmp.eq.s32.totalorder %s686_s14, 0  ;;  %p55_p3 = scmp.ne.s32.totalorder %s670_s10, %s666_s9 }
   0xc   : > { %s930_s17 = smov (%p35_p0, %s33_s17), 0  ;;  %p56_p5 = scmp.eq.s32.totalorder %s456_s15, 0 }
   0xd   : > { %p756_p4 = por %p50_p2, %p49_p1  ;;  %s37_s20 = ssub.s32 %s682_s13, %s930_s17 }
   0xe   : > { %p107_p6 = scmp.eq.s32.totalorder %s456_s15, 1  ;;  %p40_p7 = scmp.eq.s32.totalorder %s37_s20, 0 }
   0xf   : > { %p762_p8 = por %p56_p5, %p55_p3  ;;  %p113_p10 = scmp.eq.s32.totalorder %s457_s16, 1 }
  0x10   : > { %p766_p9 = por %p107_p6, %p49_p1  ;;  %p916_p12 = scmp.ge.s32.totalorder %s686_s14, 2 }
  0x11   : > { %s771_s23 = scalar_select %p40_p7, %s674_s11, %s42_s18  }
  0x12   : > { %s919_s22 = scalar_select %p766_p9, 1, 0 }
  0x13   : > { %p773_p11 = por %p113_p10, %p55_p3  ;;  %129 = sbr.rel (%p916_p12) target bundleno = 84 (0x54), region = 16 }
  0x15   : > { %s920_s24 = scalar_select %p773_p11, 1, 0 }
  0x1a   : > { %132 = sbr.rel (!%p756_p4) target bundleno = 58 (0x3a), region = 20  ;;  %s133_s25 = sand.u32 (%p756_p4), 1, %s674_s11  }
  0x1b   : > { %s460_s26 = sshll.u32 (%p756_p4), %s133_s25, 5  ;;  %s783_s27 = scalar_lea.sflag (%p756_p4), [#allocation3], %s133_s25 }
  0x1c   : > { %s137_s28 = scalar_lea.vmem (%p756_p4), [#allocation2], %s460_s26 }
  0x21   : > { %143 = vsyncadd %s783_s27, 256  ;;  %s477_s29 = sshll.u32 %s682_s13, 8  ;;  %s151_s30 = sshll.u32 %s137_s28, 4  ;;  %s792_s30 = int_to_ptr.vmem [resolvable:$true] %s151_s30 }
  0x22   : > { %s790_s5 = scalar_lea.hbm %s913_s0, %s477_s29  ;;  %s554_s15 = scalar_lea.hbm %s913_s0, 512 }
  0x23   : > { %s552_s6 = scalar_lea.hbm %s790_s5, 256  ;;  %p555_p0 = scmp.lt.u32.totalorder %s790_s5, %s913_s0 }
  0x24   : > { %p553_p13 = scmp.ne.s32.totalorder %s790_s5, %s552_s6  ;;  %p556_p1 = scmp.lt.u32.totalorder %s554_s15, %s552_s6 }
  0x25   : > { %p558_p3 = scmp.lt.u32.totalorder %s552_s6, %s790_s5 }
  0x26   : > { %p557_p2 = por %p556_p1, %p555_p0 }
  0x28   : > { %p559_p5 = por %p558_p3, %p557_p2 }
  0x2a   : > { %p560_p6 = pnand %p559_p5, %p553_p13 }
  0x2c   : > { %563 = shalt.err (!%p560_p6)
}
  0x2d   : > { %s564_s20 = scalar_lea.vmem %s792_s30, 256  ;;  %s688_s25 = smov [#allocation2]  }
  0x2e   : > { %p565_p7 = scmp.ne.s32.totalorder %s792_s30, %s564_s20  ;;  %s566_s26 = sshll.u32 %s688_s25, 4  ;;  %s567_s26 = int_to_ptr.vmem [resolvable:$false] %s566_s26 }
  0x2f   : > { %s568_s28 = scalar_lea.vmem %s567_s26, 1024  ;;  %p569_p10 = scmp.lt.s32.totalorder %s792_s30, %s567_s26 }
  0x30   : > { %p570_p12 = scmp.lt.s32.totalorder %s568_s28, %s564_s20 }
  0x32   : > { %p571_p11 = por %p570_p12, %p569_p10 }
  0x34   : > { %p572_p9 = pnand %p571_p11, %p565_p7 }
  0x36   : > { %575 = shalt.err (!%p572_p9)
}
  0x37   : > { %s689_s29 = smov 128   ;;  %s690_s3 = smov 256  }
  0x38   : > { %s691_s4 = smov 8  }
  0x39   : > { %157 = dma.hbm_to_vmem [thread:$0]  %s790_s5, 256, %s792_s30, %s783_s27, %s689_s29, %s690_s3, %s691_s4  }
  0x3a PF: > { %s161_s6 = sand.u32 1, %s674_s11   ;;  %s478_s7 = sshll.u32 %s682_s13, 8 }
  0x3b   : > { %s463_s8 = sshll.u32 %s161_s6, 4  ;;  %s815_s18 = scalar_lea.hbm %s914_s1, %s478_s7 }
  0x3c   : > { %s165_s20 = scalar_lea.vmem [#allocation5], %s463_s8  ;;  %s819_s27 = scalar_lea.sflag [#allocation6], %s161_s6 }
  0x3d   : > { %s172_s25 = sshll.u32 %s165_s20, 4  ;;  %s576_s30 = scalar_lea.hbm %s815_s18, 256  ;;  %s817_s25 = int_to_ptr.vmem [resolvable:$true] %s172_s25 }
  0x3e   : > { %p577_p9 = scmp.ne.s32.totalorder %s815_s18, %s576_s30  ;;  %s580_s28 = scalar_lea.hbm %s914_s1, 512 }
  0x3f   : > { %p581_p13 = scmp.lt.u32.totalorder %s815_s18, %s914_s1  ;;  %p582_p0 = scmp.lt.u32.totalorder %s580_s28, %s576_s30 }
  0x40   : > { %p578_p11 = pnand %p577_p9, %p756_p4  ;;  %p584_p2 = scmp.lt.u32.totalorder %s576_s30, %s815_s18 }
  0x41   : > { %p583_p1 = por %p582_p0, %p581_p13 }
  0x42   : > { %p579_p12 = pneg %p578_p11 }
  0x43   : > { %p585_p3 = por %p584_p2, %p583_p1 }
  0x45   : > { %p586_p5 = pnand %p585_p3, %p579_p12 }
  0x47   : > { %589 = shalt.err (!%p586_p5)
}
  0x48   : > { %s590_s4 = scalar_lea.vmem %s817_s25, 256  ;;  %s692_s6 = smov [#allocation5]  }
  0x49   : > { %p591_p6 = scmp.ne.s32.totalorder %s817_s25, %s590_s4  ;;  %s594_s7 = sshll.u32 %s692_s6, 4  ;;  %s595_s7 = int_to_ptr.vmem [resolvable:$false] %s594_s7 }
  0x4a   : > { %s596_s8 = scalar_lea.vmem %s595_s7, 512  ;;  %p597_p9 = scmp.lt.s32.totalorder %s817_s25, %s595_s7 }
  0x4b   : > { %p592_p7 = pnand %p591_p6, %p756_p4  ;;  %p598_p11 = scmp.lt.s32.totalorder %s596_s8, %s590_s4 }
  0x4d   : > { %p593_p10 = pneg %p592_p7  ;;  %p599_p13 = por %p598_p11, %p597_p9 }
  0x4f   : > { %p600_p0 = pnand %p599_p13, %p593_p10 }
  0x51   : > { %603 = shalt.err (!%p600_p0)
}
  0x52   : > { %s693_s15 = smov 128   ;;  %s694_s16 = smov 8  }
  0x53   : > { %486 = dma.hbm_to_vmem [thread:$0]  (%p756_p4), %s815_s18, 256, %s817_s25, %s819_s27, %s693_s15, %s693_s15, %s694_s16  }
  0x54 PF: > { %p466_p12 = scmp.ge.s32.totalorder %s686_s14, 1  ;;  %p180_p1 = scmp.lt.s32.totalorder %s686_s14, 3 }
  0x56   : > { %p181_p2 = pnand %p466_p12, %p180_p1 }
  0x57   : > { %s846_s20 = sand.u32 (!%p181_p2), 1, %s670_s10  }
  0x58   : > { %184 = sbr.rel (%p181_p2) target bundleno = 346 (0x15a), region = 28  ;;  %s467_s30 = sshll.u32 (!%p181_p2), %s846_s20, 5 }
  0x59   : > { %s187_s5 = scalar_lea.sflag (!%p181_p2), [#allocation3], %s846_s20  ;;  %s190_s26 = scalar_lea.vmem (!%p181_p2), [#allocation2], %s467_s30 }
  0x5f   : > { %653 = dma.done.wait (%p762_p8), %s187_s5, 512  }
  0x60   : > { %655 = vsyncadd (%p762_p8), %s187_s5, 4294966784  ;;  %s468_s19 = sshll.u32 %s846_s20, 4  ;;  %s196_s18 = scalar_lea.sflag [#allocation6], %s846_s20 }
  0x61   : > { %s199_s25 = scalar_lea.vmem [#allocation5], %s468_s19 }
  0x62   : > { %657 = dma.done.wait (%p762_p8), %s196_s18, 256  }
  0x63   : > { %659 = vsyncadd (%p762_p8), %s196_s18, 4294967040  ;;  %v695_v0 = vmov 0.0   ;;  %v234_v1 = vld [vmem:[%s190_s26 + $0x8] sm:$0xff]  ;;  %v236_v2 = vld [vmem:[%s190_s26 + $0x18] sm:$0xff]  ;;  %vm237_vm0 = vcmask 130048   ;;  %s224_s21 = scalar_lea.vmem [#allocation7], %s467_s30 }
  0x64   : > { %308 = vmatprep.mubr.f32.mxu0 %v695_v0  ;;  %314 = vmatprep.mubr.f32.mxu1 %v695_v0  ;;  %v233_v3 = vld [vmem:[%s190_s26] sm:$0xff]  ;;  %v480_v4 = vpack.c.bf16 %v236_v2, %v234_v1  ;;  %v235_v5 = vld [vmem:[%s190_s26 + $0x10] sm:$0xff]  ;;  %v232_v8 = vld [vmem:[%s199_s25 + $0x8] sm:$0xff]  ;;  %s326_s27 = scalar_lea.sflag [#allocation4], %s846_s20  ;;  %p921_p4 = scmp.ne.s32.totalorder %s919_s22, 0 }
  0x65   : > { %v482_v6 = vpack.c.bf16 %v235_v5, %v233_v3  ;;  %v231_v7 = vld [vmem:[%s199_s25] sm:$0xff] }
  0x66   : > { %481 = vmatprep.subr.bf16.mxu0 %v480_v4  ;;  %484 = vmatprep.subr.bf16.mxu1 %v480_v4 }
  0x67   : > { %483 = vmatpush1.bf16.msra.mxu0 %v482_v6  ;;  %485 = vmatpush1.bf16.msra.mxu1 %v482_v6 }
  0x6a   : > { %470 = vmatmul.mubr.msk.f32.vlgmr.msra.gmra.mrb[0].mxu0 %vm237_vm0, %v231_v7  ;;  %471 = vmatmul.mubr.msk.f32.vlgmr.msra.gmra.mrb[0].mxu1 %vm237_vm0, %v232_v8 }
 0x139   : > { %332 = sbr.rel (!%p921_p4) target bundleno = 346 (0x15a), region = 40 }
 0x13d   : > { %v310_v9 = vpop.f32.mrb[0].mxu0  ;;  %v316_v10 = vpop.f32.mrb[0].mxu1 }
 0x13e   : > { %321 = vst [vmem:[%s224_s21] sm:$0xff] %v310_v9  ;;  %323 = vst [vmem:[%s224_s21 + $0x10] sm:$0xff] %v316_v10  ;;  %v312_v11 = vpop.f32.mrb[1].mxu0  ;;  %v318_v12 = vpop.f32.mrb[1].mxu1 }
 0x13f   : > { %322 = vst [vmem:[%s224_s21 + $0x8] sm:$0xff] %v312_v11  ;;  %324 = vst [vmem:[%s224_s21 + $0x18] sm:$0xff] %v318_v12 }
 0x140   : > { %338 = vsyncadd %s326_s27, 256  ;;  %s479_s28 = sshll.u32 %s678_s12, 8  ;;  %s346_s29 = sshll.u32 %s224_s21, 4  ;;  %s871_s29 = int_to_ptr.vmem [resolvable:$true] %s346_s29 }
 0x141   : > { %s869_s6 = scalar_lea.hbm %s915_s2, %s479_s28  ;;  %s604_s7 = scalar_lea.vmem %s871_s29, 256 }
 0x142   : > { %p605_p8 = scmp.ne.s32.totalorder %s871_s29, %s604_s7  ;;  %s696_s22 = smov [#allocation7]  }
 0x143   : > { %s606_s8 = sshll.u32 %s696_s22, 4  ;;  %s607_s8 = int_to_ptr.vmem [resolvable:$false] %s606_s8 }
 0x144   : > { %s608_s15 = scalar_lea.vmem %s607_s8, 1024  ;;  %p609_p3 = scmp.lt.s32.totalorder %s871_s29, %s607_s8 }
 0x145   : > { %p610_p5 = scmp.lt.s32.totalorder %s608_s15, %s604_s7 }
 0x147   : > { %p611_p6 = por %p610_p5, %p609_p3 }
 0x149   : > { %p612_p7 = pnand %p611_p6, %p605_p8 }
 0x14b   : > { %615 = shalt.err (!%p612_p7)
}
 0x14c   : > { %s616_s12 = scalar_lea.hbm %s869_s6, 256  ;;  %s618_s5 = scalar_lea.hbm %s915_s2, 512 }
 0x14d   : > { %p617_p10 = scmp.ne.s32.totalorder %s869_s6, %s616_s12  ;;  %p619_p9 = scmp.lt.u32.totalorder %s869_s6, %s915_s2 }
 0x14e   : > { %p620_p11 = scmp.lt.u32.totalorder %s618_s5, %s616_s12  ;;  %p622_p0 = scmp.lt.u32.totalorder %s616_s12, %s869_s6 }
 0x150   : > { %p621_p13 = por %p620_p11, %p619_p9 }
 0x152   : > { %p623_p12 = por %p622_p0, %p621_p13 }
 0x154   : > { %p624_p1 = pnand %p623_p12, %p617_p10 }
 0x156   : > { %627 = shalt.err (!%p624_p1)
}
 0x157   : > { %s697_s18 = smov 256   ;;  %s698_s25 = smov 128  }
 0x158   : > { %s699_s21 = smov 8  }
 0x159   : > { %352 = dma.vmem_to_hbm [thread:$0]  %s871_s29, 256, %s869_s6, %s326_s27, %s697_s18, %s698_s25, %s699_s21  }
 0x15a PF: > { %s361_s28 = sand.u32 1, %s666_s9   ;;  %p922_p2 = scmp.ne.s32.totalorder %s920_s24, 0 }
 0x15b   : > { %p923_p4 = scmp.ge.s32.totalorder %s686_s14, 2  ;;  %s362_s3 = scalar_lea.sflag [#allocation4], %s361_s28 }
 0x15d   : > { %p491_p8 = pnand %p923_p4, %p922_p2 }
 0x15f   : > { %661 = dma.done.wait (!%p491_p8), %s362_s3, 512  }
 0x160   : > { %663 = vsyncadd (!%p491_p8), %s362_s3, 4294966784  ;;  %s21_s14 = sadd.s32 1, %s686_s14   ;;  %s924_s9 = smov %s670_s10 }
 0x161   : > { %p18_p3 = scmp.ge.s32.totalorder %s21_s14, 4   ;;  %s925_s10 = smov %s674_s11 }
 0x162   : > { %s926_s11 = smov %s771_s23  ;;  %s927_s12 = smov %s682_s13 }
 0x163   : > { %s928_s13 = smov %s930_s17  ;;  %20 = sbr.rel (!%p18_p3) target bundleno = 8 (0x8), region = 86 }
 0x16a   :  { %367 = vsyncpa [#allocation3], 1 }
 0x16b   :  { %369 = vsyncpa [#allocation3 + $0x1], 1 }
 0x16c   :  { %370 = vsyncpa [#allocation6], 1 }
 0x16d   :  { %372 = vsyncpa [#allocation6 + $0x1], 1 }
 0x16e   :  { %373 = vsyncpa [#allocation4], 1 }
 0x16f   :  { %375 = vsyncpa [#allocation4 + $0x1], 1 }

</bundles_post_ra>
